<compile_context>
chip_gen: v7x
topology: tpu7x:2x2x1
jax: 0.10.0
libtpu: 0.0.40
codegen_flags: <defaults>
</compile_context>

<pallas_src>
import functools

import jax
import jax.numpy as jnp
import numpy as np
from jax.experimental import pallas as pl
from jax.experimental.pallas import tpu as pltpu

BN_EPS = 1e-5
_VMEM_LIMIT = 32 << 20  # explicit scoped-VMEM budget, safe on v5e/v6e/v7x


def _round_up(v, m):
    return (v + m - 1) // m * m


def _choose_tile_m(M, c_stack, c_out):
    """Pick an M-tile: as big as possible (amortizes the ~0.35us per-step
    overhead and keeps the pipeline near the HBM roofline) while the
    double-buffered f32 working set stays well under the VMEM budget."""
    tm = 1024
    while tm > 8 and 2 * tm * (c_stack + 2 * c_out) * 4 > (12 << 20):
        tm //= 2
    tm = min(tm, _round_up(M, 8))
    return max(8, _round_up(tm, 8))


def _conv_stats_kernel(x_ref, w_ref, y_ref, stats_ref):
    """Pass 1: relu -> fused block-diagonal matmul -> raw y + per-tile stats."""
    a = jnp.maximum(x_ref[...], 0)                                   # ReLU (VPU)
    y = jnp.dot(a, w_ref[...], preferred_element_type=jnp.float32)   # MXU, f32 acc
    y_ref[...] = y.astype(y_ref.dtype)
    # Per-tile partial sum / sum-of-squares (single sweep over y, f32).
    s = jnp.sum(y, axis=0, keepdims=True)                            # (1, C_out)
    ss = jnp.sum(y * y, axis=0, keepdims=True)                       # (1, C_out)
    pad = jnp.zeros((stats_ref.shape[0] - 2, stats_ref.shape[1]), jnp.float32)
    stats_ref[...] = jnp.concatenate([s, ss, pad], axis=0)           # (8, C_out)


def _bn_apply_kernel(y_ref, scale_ref, shift_ref, o_ref):
    """Pass 2: out = y * scale + shift (BN folded to one mul+add)."""
    y = y_ref[...].astype(jnp.float32)
    o_ref[...] = (y * scale_ref[...] + shift_ref[...]).astype(o_ref.dtype)


@functools.partial(jax.jit, static_argnames=("compute_dtype",))
def factorized_reduce(x, w1, w2, gamma, beta, *, compute_dtype=jnp.float32):
    """x: (N, C_in, H, W) NCHW.  w1, w2: (C_half, C_in, 1, 1).  gamma/beta: (C_out,)."""
    N, C_in, H, W = x.shape
    assert H % 2 == 0 and W % 2 == 0, "even spatial dims (PyTorch concat requires matching sizes)"
    C_half = w1.shape[0]
    C_out = 2 * C_half
    Ho, Wo = H // 2, W // 2
    M = N * Ho * Wo
    C_stack = 2 * C_in

    # --- glue: single NHWC transpose + reshape-based even/odd select ---------
    x_nhwc = jnp.transpose(x, (0, 2, 3, 1))                         # (N, H, W, C_in)
    x5 = x_nhwc.reshape(N, Ho, 2, Wo, 2, C_in)
    xs = jnp.concatenate([x5[:, :, 0, :, 0, :],                     # conv_1 samples (0::2, 0::2)
                          x5[:, :, 1, :, 1, :]], axis=-1)           # conv_2 samples (1::2, 1::2)
    X = xs.reshape(M, C_stack).astype(compute_dtype)

    # Block-diagonal weight: y = X @ W gives [conv_1 | conv_2] channels directly.
    w1m = w1.reshape(C_half, C_in).T.astype(compute_dtype)          # (C_in, C_half)
    w2m = w2.reshape(C_half, C_in).T.astype(compute_dtype)
    Wbd = jnp.zeros((C_stack, C_out), dtype=compute_dtype)
    Wbd = Wbd.at[:C_in, :C_half].set(w1m)
    Wbd = Wbd.at[C_in:, C_half:].set(w2m)

    # --- M tiling (ragged rows zero-padded; stats divide by true M) ----------
    TM = _choose_tile_m(M, C_stack, C_out)
    num_tiles = pl.cdiv(M, TM)
    M_pad = num_tiles * TM
    if M_pad != M:
        X = jnp.pad(X, ((0, M_pad - M), (0, 0)))

    cparams = pltpu.CompilerParams(dimension_semantics=("parallel",),
                                   vmem_limit_bytes=_VMEM_LIMIT)

    # --- pass 1: conv + per-tile stats ----------------------------------------
    y, partial = pl.pallas_call(
        _conv_stats_kernel,
        out_shape=(jax.ShapeDtypeStruct((M_pad, C_out), compute_dtype),
                   jax.ShapeDtypeStruct((num_tiles * 8, C_out), jnp.float32)),
        grid=(num_tiles,),
        in_specs=[
            pl.BlockSpec((TM, C_stack), lambda i: (i, 0)),
            pl.BlockSpec((C_stack, C_out), lambda i: (0, 0)),
        ],
        out_specs=(
            pl.BlockSpec((TM, C_out), lambda i: (i, 0)),
            pl.BlockSpec((8, C_out), lambda i: (i, 0)),
        ),
        compiler_params=cparams,
    )(X, Wbd)

    # --- tiny JAX glue: reduce partials, fold BN into scale/shift ------------
    part = partial.reshape(num_tiles, 8, C_out)
    s_tot = jnp.sum(part[:, 0, :], axis=0)                          # (C_out,)
    ss_tot = jnp.sum(part[:, 1, :], axis=0)
    mean = s_tot / M
    var = jnp.maximum(ss_tot / M - mean * mean, 0.0)                # biased var (training BN)
    inv = jax.lax.rsqrt(var + BN_EPS)
    g32 = gamma.astype(jnp.float32)
    scale = (g32 * inv).reshape(1, C_out)
    shift = (beta.astype(jnp.float32) - mean * g32 * inv).reshape(1, C_out)

    # --- pass 2: normalize tile-by-tile ---------------------------------------
    out = pl.pallas_call(
        _bn_apply_kernel,
        out_shape=jax.ShapeDtypeStruct((M_pad, C_out), x.dtype),
        grid=(num_tiles,),
        in_specs=[
            pl.BlockSpec((TM, C_out), lambda i: (i, 0)),
            pl.BlockSpec((1, C_out), lambda i: (0, 0)),
            pl.BlockSpec((1, C_out), lambda i: (0, 0)),
        ],
        out_specs=pl.BlockSpec((TM, C_out), lambda i: (i, 0)),
        compiler_params=cparams,
    )(y, scale, shift)

    # (M, C_out) -> (N, Ho, Wo, C_out) -> NCHW
    out = out[:M].reshape(N, Ho, Wo, C_out)
    return jnp.transpose(out, (0, 3, 1, 2))


def _reference(x, w1, w2, gamma, beta):
    """Pure-JAX reference mirroring the PyTorch forward (training-mode BN)."""
    xr = jnp.maximum(x, 0.0)
    C_half, C_in = w1.shape[0], w1.shape[1]
    w1m = w1.reshape(C_half, C_in)
    w2m = w2.reshape(C_half, C_in)
    y1 = jnp.einsum('nchw,oc->nohw', xr[:, :, ::2, ::2], w1m)
    y2 = jnp.einsum('nchw,oc->nohw', xr[:, :, 1::2, 1::2], w2m)
    y = jnp.concatenate([y1, y2], axis=1)
    mean = jnp.mean(y, axis=(0, 2, 3), keepdims=True)
    var = jnp.mean((y - mean) ** 2, axis=(0, 2, 3), keepdims=True)
    g = gamma.reshape(1, -1, 1, 1)
    b = beta.reshape(1, -1, 1, 1)
    return (y - mean) * jax.lax.rsqrt(var + BN_EPS) * g + b


if __name__ == "__main__":
    N, C_in, H, W = 2, 4, 16, 16
    C_out = 4          # must be even
    C_half = C_out // 2

    key = jax.random.PRNGKey(0)
    kx, k1, k2 = jax.random.split(key, 3)
    x = jax.random.normal(kx, (N, C_in, H, W), dtype=jnp.float32)
    # Conv2d(C_in, C_out//2, 1, stride=2, bias=False) synthetic weights.
    w1 = jax.random.normal(k1, (C_half, C_in, 1, 1), dtype=jnp.float32) * 0.5
    w2 = jax.random.normal(k2, (C_half, C_in, 1, 1), dtype=jnp.float32) * 0.5
    # BatchNorm2d(affine=True) init: weight=1, bias=0.
    gamma = jnp.ones((C_out,), dtype=jnp.float32)
    beta = jnp.zeros((C_out,), dtype=jnp.float32)

    # f32 compute path (matches PyTorch numerics).  The bf16 fast path
    # (compute_dtype=jnp.bfloat16) is available but not exercised here to keep
    # the smoke test to a single jit compile.
    out = factorized_reduce(x, w1, w2, gamma, beta)
    jax.block_until_ready(out)
    assert out.shape == (N, C_out, H // 2, W // 2)

    ref = _reference(x, w1, w2, gamma, beta)
    np.testing.assert_allclose(np.asarray(out), np.asarray(ref), rtol=1e-4, atol=1e-4)

    print("KERNEL_OK")
</pallas_src>

<mosaic_0001>
module attributes {stable_mosaic.version = 11 : i64} {
  func.func @_conv_stats_kernel(%arg0: i32, %arg1: memref<128x8xf32, #tpu.memory_space<vmem>>, %arg2: memref<8x4xf32, #tpu.memory_space<vmem>>, %arg3: memref<128x4xf32, #tpu.memory_space<vmem>>, %arg4: memref<8x4xf32, #tpu.memory_space<vmem>>) attributes {dimension_semantics = [#tpu.dimension_semantics<parallel>], iteration_bounds = array<i64: 1>, scalar_prefetch = 0 : i64, scratch_operands = 0 : i64, tpu.core_type = #tpu.core_type<tc>, window_params = [{transform_indices = @transform_0, window_bounds = array<i64: 128, 8>}, {pipeline_mode = #tpu.pipeline_mode<synchronous>, transform_indices = @transform_1, window_bounds = array<i64: 8, 4>}, {transform_indices = @transform_2, window_bounds = array<i64: 128, 4>}, {transform_indices = @transform_3, window_bounds = array<i64: 8, 4>}]} {
    %c0 = arith.constant 0 : index
    %c0_0 = arith.constant 0 : index
    %0 = vector.load %arg1[%c0, %c0_0] : memref<128x8xf32, #tpu.memory_space<vmem>>, vector<128x8xf32>
    %cst = arith.constant 0.000000e+00 : f32
    %1 = vector.broadcast %cst : f32 to vector<128x8xf32>
    %2 = arith.maximumf %0, %1 : vector<128x8xf32>
    %c0_1 = arith.constant 0 : index
    %c0_2 = arith.constant 0 : index
    %3 = vector.load %arg2[%c0_1, %c0_2] : memref<8x4xf32, #tpu.memory_space<vmem>>, vector<8x4xf32>
    %cst_3 = arith.constant dense<0.000000e+00> : vector<128x4xf32>
    %4 = tpu.matmul %2, %3, %cst_3 {dimension_numbers = #tpu.dot_dimension_numbers<[1], [0], [0], [1], [0, 0, 1, 1], [], []>} : vector<128x8xf32>, vector<8x4xf32>, vector<128x4xf32> -> vector<128x4xf32>
    %c0_4 = arith.constant 0 : index
    %c0_5 = arith.constant 0 : index
    %5 = vector.load %arg3[%c0_4, %c0_5] : memref<128x4xf32, #tpu.memory_space<vmem>>, vector<128x4xf32>
    tpu.vector_store %arg3[%c0_4, %c0_5], %4 {strides = array<i32>} : memref<128x4xf32, #tpu.memory_space<vmem>>, vector<128x4xf32>,
    %cst_6 = arith.constant dense<0.000000e+00> : vector<4xf32>
    %6 = vector.multi_reduction <add>, %4, %cst_6 [0] : vector<128x4xf32> to vector<4xf32>
    %7 = vector.shape_cast %6 : vector<4xf32> to vector<1x4xf32>
    %8 = arith.mulf %4, %4 : vector<128x4xf32>
    %cst_7 = arith.constant dense<0.000000e+00> : vector<4xf32>
    %9 = vector.multi_reduction <add>, %8, %cst_7 [0] : vector<128x4xf32> to vector<4xf32>
    %10 = vector.shape_cast %9 : vector<4xf32> to vector<1x4xf32>
    %cst_8 = arith.constant 0.000000e+00 : f32
    %11 = vector.broadcast %cst_8 : f32 to vector<6x4xf32>
    %12 = tpu.concatenate %7, %10, %11 in 0 : vector<1x4xf32>, vector<1x4xf32>, vector<6x4xf32> -> vector<8x4xf32>
    %c0_9 = arith.constant 0 : index
    %c0_10 = arith.constant 0 : index
    %13 = vector.load %arg4[%c0_9, %c0_10] : memref<8x4xf32, #tpu.memory_space<vmem>>, vector<8x4xf32>
    tpu.vector_store %arg4[%c0_9, %c0_10], %12 {strides = array<i32>} : memref<8x4xf32, #tpu.memory_space<vmem>>, vector<8x4xf32>,
    return
  }
  func.func @transform_0(%arg0: i32) -> (i32, i32) {
    %c0_i32 = arith.constant 0 : i32
    %c0_i32_0 = arith.constant 0 : i32
    return %arg0, %c0_i32 : i32, i32
  }
  func.func @transform_1(%arg0: i32) -> (i32, i32) {
    %c0_i32 = arith.constant 0 : i32
    %c0_i32_0 = arith.constant 0 : i32
    %c0_i32_1 = arith.constant 0 : i32
    return %c0_i32, %c0_i32_0 : i32, i32
  }
  func.func @transform_2(%arg0: i32) -> (i32, i32) {
    %c0_i32 = arith.constant 0 : i32
    %c0_i32_0 = arith.constant 0 : i32
    return %arg0, %c0_i32 : i32, i32
  }
  func.func @transform_3(%arg0: i32) -> (i32, i32) {
    %c0_i32 = arith.constant 0 : i32
    %c0_i32_0 = arith.constant 0 : i32
    return %arg0, %c0_i32 : i32, i32
  }
}

module attributes {stable_mosaic.version = 11 : i64} {
  func.func @_bn_apply_kernel(%arg0: i32, %arg1: memref<128x4xf32, #tpu.memory_space<vmem>>, %arg2: memref<1x4xf32, #tpu.memory_space<vmem>>, %arg3: memref<1x4xf32, #tpu.memory_space<vmem>>, %arg4: memref<128x4xf32, #tpu.memory_space<vmem>>) attributes {dimension_semantics = [#tpu.dimension_semantics<parallel>], iteration_bounds = array<i64: 1>, scalar_prefetch = 0 : i64, scratch_operands = 0 : i64, tpu.core_type = #tpu.core_type<tc>, window_params = [{transform_indices = @transform_0, window_bounds = array<i64: 128, 4>}, {pipeline_mode = #tpu.pipeline_mode<synchronous>, transform_indices = @transform_1, window_bounds = array<i64: 1, 4>}, {pipeline_mode = #tpu.pipeline_mode<synchronous>, transform_indices = @transform_2, window_bounds = array<i64: 1, 4>}, {transform_indices = @transform_3, window_bounds = array<i64: 128, 4>}]} {
    %c0 = arith.constant 0 : index
    %c0_0 = arith.constant 0 : index
    %0 = vector.load %arg1[%c0, %c0_0] : memref<128x4xf32, #tpu.memory_space<vmem>>, vector<128x4xf32>
    %c0_1 = arith.constant 0 : index
    %c0_2 = arith.constant 0 : index
    %1 = vector.load %arg2[%c0_1, %c0_2] : memref<1x4xf32, #tpu.memory_space<vmem>>, vector<1x4xf32>
    %2 = vector.broadcast %1 : vector<1x4xf32> to vector<128x4xf32>
    %3 = arith.mulf %0, %2 : vector<128x4xf32>
    %c0_3 = arith.constant 0 : index
    %c0_4 = arith.constant 0 : index
    %4 = vector.load %arg3[%c0_3, %c0_4] : memref<1x4xf32, #tpu.memory_space<vmem>>, vector<1x4xf32>
    %5 = vector.broadcast %4 : vector<1x4xf32> to vector<128x4xf32>
    %6 = arith.addf %3, %5 : vector<128x4xf32>
    %c0_5 = arith.constant 0 : index
    %c0_6 = arith.constant 0 : index
    %7 = vector.load %arg4[%c0_5, %c0_6] : memref<128x4xf32, #tpu.memory_space<vmem>>, vector<128x4xf32>
    tpu.vector_store %arg4[%c0_5, %c0_6], %6 {strides = array<i32>} : memref<128x4xf32, #tpu.memory_space<vmem>>, vector<128x4xf32>,
    return
  }
  func.func @transform_0(%arg0: i32) -> (i32, i32) {
    %c0_i32 = arith.constant 0 : i32
    %c0_i32_0 = arith.constant 0 : i32
    return %arg0, %c0_i32 : i32, i32
  }
  func.func @transform_1(%arg0: i32) -> (i32, i32) {
    %c0_i32 = arith.constant 0 : i32
    %c0_i32_0 = arith.constant 0 : i32
    %c0_i32_1 = arith.constant 0 : i32
    return %c0_i32, %c0_i32_0 : i32, i32
  }
  func.func @transform_2(%arg0: i32) -> (i32, i32) {
    %c0_i32 = arith.constant 0 : i32
    %c0_i32_0 = arith.constant 0 : i32
    %c0_i32_1 = arith.constant 0 : i32
    return %c0_i32, %c0_i32_0 : i32, i32
  }
  func.func @transform_3(%arg0: i32) -> (i32, i32) {
    %c0_i32 = arith.constant 0 : i32
    %c0_i32_0 = arith.constant 0 : i32
    return %arg0, %c0_i32 : i32, i32
  }
}

</mosaic_0001>

<bundles_post_ra>
// kernel: factorized_reduce.3
= control target key start
LH: loop header
LB: loop body
LE: loop exit
PB: predicated region body
PF: predicated region fallthrough
CT: control target
= control target key end

     0   :  { %vm76_vm0 = vcmask 31744   ;;  %s237_s0 = inlined_call_operand.vmem [shape: f32[128,4], index: 0, kind: input, shape index: {}]   ;;  %s238_s1 = inlined_call_operand.vmem [shape: f32[1,4], index: 1, kind: input, shape index: {}]   ;;  %s239_s2 = inlined_call_operand.vmem [shape: f32[1,4], index: 2, kind: input, shape index: {}]   ;;  %s240_s3 = inlined_call_operand.vmem [shape: f32[128,4], index: 3, kind: output, shape index: {}]  }
   0x1   :  { %v14_v0 = vld [vmem:[%s237_s0] sm:$0xff]  ;;  %v15_v4 = vld [vmem:[%s237_s0 + $0x8] sm:$0xff]  ;;  %v16_v5 = vld [vmem:[%s237_s0 + $0x10] sm:$0xff] }
   0x2   :  { %v97_v1 = vld [vmem:[%s238_s1] ss:$0 sm:$0xff]  ;;  %v17_v6 = vld [vmem:[%s237_s0 + $0x18] sm:$0xff]  ;;  %v19_v11 = vld [vmem:[%s237_s0 + $0x28] sm:$0xff] }
   0x3   :  { %v98_v2 = vld [vmem:[%s239_s2] ss:$0 sm:$0xff]  ;;  %v37_v3 = vmul.f32 %v97_v1, %v14_v0  ;;  %v38_v7 = vmul.f32 %v97_v1, %v15_v4  ;;  %v39_v8 = vmul.f32 %v97_v1, %v16_v5  ;;  %v40_v9 = vmul.f32 %v97_v1, %v17_v6  ;;  %v20_v12 = vld [vmem:[%s237_s0 + $0x30] sm:$0xff]  ;;  %v21_v17 = vld [vmem:[%s237_s0 + $0x38] sm:$0xff] }
   0x4   :  { %v18_v10 = vld [vmem:[%s237_s0 + $0x20] sm:$0xff]  ;;  %v42_v15 = vmul.f32 %v97_v1, %v19_v11  ;;  %v43_v16 = vmul.f32 %v97_v1, %v20_v12  ;;  %v23_v19 = vld [vmem:[%s237_s0 + $0x48] sm:$0xff]  ;;  %v44_v23 = vmul.f32 %v97_v1, %v21_v17  ;;  %v24_v24 = vld [vmem:[%s237_s0 + $0x50] sm:$0xff] }
   0x5   :  { %v60_v13 = vadd.f32 %v98_v2, %v37_v3  ;;  %v41_v14 = vmul.f32 %v97_v1, %v18_v10  ;;  %v22_v18 = vld [vmem:[%s237_s0 + $0x40] sm:$0xff]  ;;  %v61_v20 = vadd.f32 %v98_v2, %v38_v7  ;;  %v62_v21 = vadd.f32 %v98_v2, %v39_v8  ;;  %v25_v25 = vld [vmem:[%s237_s0 + $0x58] sm:$0xff]  ;;  %v27_v31 = vld [vmem:[%s237_s0 + $0x68] sm:$0xff] }
   0x6   :  { %v63_v22 = vadd.f32 %v98_v2, %v40_v9  ;;  %v26_v26 = vld [vmem:[%s237_s0 + $0x60] sm:$0xff]  ;;  %v65_v28 = vadd.f32 %v98_v2, %v42_v15  ;;  %v66_v29 = vadd.f32 %v98_v2, %v43_v16  ;;  %v45_v30 = vmul.f32 %v97_v1, %v22_v18  ;;  %v28_v32 = vld [vmem:[%s237_s0 + $0x70] sm:$0xff]  ;;  %v29_v33 = vld [vmem:[%s237_s0 + $0x78] sm:$0xff] }
   0x7   :  { %77 = vst.msk [vmem:[%s240_s3] sm:$0xff] %vm76_vm0, %v60_v13  ;;  %v64_v27 = vadd.f32 %v98_v2, %v41_v14  ;;  %78 = vst.msk [vmem:[%s240_s3 + $0x8] sm:$0xff] %vm76_vm0, %v61_v20  ;;  %v67_v34 = vadd.f32 %v98_v2, %v44_v23  ;;  %v46_v35 = vmul.f32 %v97_v1, %v23_v19 }
   0x8   :  { %79 = vst.msk [vmem:[%s240_s3 + $0x10] sm:$0xff] %vm76_vm0, %v62_v21  ;;  %80 = vst.msk [vmem:[%s240_s3 + $0x18] sm:$0xff] %vm76_vm0, %v63_v22  ;;  %v47_v36 = vmul.f32 %v97_v1, %v24_v24  ;;  %v48_v37 = vmul.f32 %v97_v1, %v25_v25  ;;  %v68_v38 = vadd.f32 %v98_v2, %v45_v30 }
   0x9   :  { %81 = vst.msk [vmem:[%s240_s3 + $0x20] sm:$0xff] %vm76_vm0, %v64_v27  ;;  %82 = vst.msk [vmem:[%s240_s3 + $0x28] sm:$0xff] %vm76_vm0, %v65_v28  ;;  %v49_v39 = vmul.f32 %v97_v1, %v26_v26  ;;  %v50_v40 = vmul.f32 %v97_v1, %v27_v31  ;;  %v51_v41 = vmul.f32 %v97_v1, %v28_v32 }
   0xa   :  { %83 = vst.msk [vmem:[%s240_s3 + $0x30] sm:$0xff] %vm76_vm0, %v66_v29  ;;  %84 = vst.msk [vmem:[%s240_s3 + $0x38] sm:$0xff] %vm76_vm0, %v67_v34  ;;  %v69_v42 = vadd.f32 %v98_v2, %v46_v35  ;;  %v70_v43 = vadd.f32 %v98_v2, %v47_v36  ;;  %v71_v44 = vadd.f32 %v98_v2, %v48_v37 }
   0xb   :  { %v52_v45 = vmul.f32 %v97_v1, %v29_v33  ;;  %85 = vst.msk [vmem:[%s240_s3 + $0x40] sm:$0xff] %vm76_vm0, %v68_v38  ;;  %v72_v46 = vadd.f32 %v98_v2, %v49_v39  ;;  %v73_v47 = vadd.f32 %v98_v2, %v50_v40  ;;  %v74_v48 = vadd.f32 %v98_v2, %v51_v41 }
   0xc   :  { %86 = vst.msk [vmem:[%s240_s3 + $0x48] sm:$0xff] %vm76_vm0, %v69_v42  ;;  %87 = vst.msk [vmem:[%s240_s3 + $0x50] sm:$0xff] %vm76_vm0, %v70_v43 }
   0xd   :  { %88 = vst.msk [vmem:[%s240_s3 + $0x58] sm:$0xff] %vm76_vm0, %v71_v44  ;;  %v75_v49 = vadd.f32 %v98_v2, %v52_v45  ;;  %89 = vst.msk [vmem:[%s240_s3 + $0x60] sm:$0xff] %vm76_vm0, %v72_v46 }
   0xe   :  { %90 = vst.msk [vmem:[%s240_s3 + $0x68] sm:$0xff] %vm76_vm0, %v73_v47  ;;  %91 = vst.msk [vmem:[%s240_s3 + $0x70] sm:$0xff] %vm76_vm0, %v74_v48 }
   0xf   :  { %92 = vst.msk [vmem:[%s240_s3 + $0x78] sm:$0xff] %vm76_vm0, %v75_v49 }

// kernel: factorized_reduce.2
= control target key start
LH: loop header
LB: loop body
LE: loop exit
PB: predicated region body
PF: predicated region fallthrough
CT: control target
= control target key end

     0   :  { %vm46_vm0 = vcmask 64512   ;;  %vm240_vm1 = vcmask 31744   ;;  %vm347_vm2 = vcmask 1040384   ;;  %vm349_vm3 = vcmask 1041408   ;;  %s614_s1 = inlined_call_operand.vmem [shape: f32[8,4], index: 1, kind: input, shape index: {}]   ;;  %s615_s0 = inlined_call_operand.vmem [shape: f32[128,8], index: 0, kind: input, shape index: {}]   ;;  %s616_s2 = inlined_call_operand.vmem [shape: f32[128,4], index: 2, kind: output, shape index: {0}]   ;;  %s617_s3 = inlined_call_operand.vmem [shape: f32[8,4], index: 3, kind: output, shape index: {1}]  }
   0x1   :  { %v45_v0 = vld [vmem:[%s614_s1] sm:$0xff]  ;;  %v14_v2 = vld [vmem:[%s615_s0 + $0x8] sm:$0xff]  ;;  %v15_v5 = vld [vmem:[%s615_s0 + $0x10] sm:$0xff] }
   0x2   :  { %v13_v1 = vld [vmem:[%s615_s0] sm:$0xff]  ;;  %393 = vmatprep.subr.mxu0 %v45_v0  ;;  %v30_v4 = vmax.f32 %v14_v2, 0.0  ;;  %v16_v6 = vld [vmem:[%s615_s0 + $0x18] sm:$0xff]  ;;  %419 = vmatprep.subr.mxu1 %v45_v0  ;;  %v31_v7 = vmax.f32 %v15_v5, 0.0  ;;  %v22_v10 = vld [vmem:[%s615_s0 + $0x48] sm:$0xff] }
   0x3   :  { %v29_v3 = vmax.f32 %v13_v1, 0.0  ;;  %394 = vmatpush3.msra.mxu0 %v45_v0  ;;  %v17_v8 = vld [vmem:[%s615_s0 + $0x20] sm:$0xff]  ;;  %420 = vmatpush3.msra.mxu1 %v45_v0  ;;  %v23_v11 = vld [vmem:[%s615_s0 + $0x50] sm:$0xff]  ;;  %v32_v12 = vmax.f32 %v16_v6, 0.0  ;;  %v38_v14 = vmax.f32 %v22_v10, 0.0  ;;  %v24_v16 = vld [vmem:[%s615_s0 + $0x58] sm:$0xff] }
   0x4   :  { %v21_v9 = vld [vmem:[%s615_s0 + $0x40] sm:$0xff]  ;;  %v39_v15 = vmax.f32 %v23_v11, 0.0  ;;  %v33_v17 = vmax.f32 %v17_v8, 0.0  ;;  %v18_v18 = vld [vmem:[%s615_s0 + $0x28] sm:$0xff]  ;;  %v19_v20 = vld [vmem:[%s615_s0 + $0x30] sm:$0xff]  ;;  %v40_v21 = vmax.f32 %v24_v16, 0.0 }
   0x5   :  { %395 = vmatprep.mubr.msk.f32.mxu0 %vm46_vm0, %v29_v3  ;;  %v37_v13 = vmax.f32 %v21_v9, 0.0  ;;  %v25_v19 = vld [vmem:[%s615_s0 + $0x60] sm:$0xff]  ;;  %v34_v22 = vmax.f32 %v18_v18, 0.0  ;;  %v26_v24 = vld [vmem:[%s615_s0 + $0x68] sm:$0xff]  ;;  %v35_v25 = vmax.f32 %v19_v20, 0.0  ;;  %v20_v26 = vld [vmem:[%s615_s0 + $0x38] sm:$0xff] }
   0x6   :  { %396 = vmatmul.mubr.msk.f32.vlgmr.msra.gmra.mrb[0].mxu0 %vm46_vm0, %v30_v4  ;;  %v41_v23 = vmax.f32 %v25_v19, 0.0  ;;  %v27_v27 = vld [vmem:[%s615_s0 + $0x70] sm:$0xff]  ;;  %v42_v28 = vmax.f32 %v26_v24, 0.0  ;;  %v36_v29 = vmax.f32 %v20_v26, 0.0  ;;  %v28_v31 = vld [vmem:[%s615_s0 + $0x78] sm:$0xff] }
   0x7   :  { %398 = vmatprep.mubr.msk.f32.mxu0 %vm46_vm0, %v31_v7  ;;  %407 = vmatprep.mubr.msk.f32.mxu1 %vm46_vm0, %v37_v13  ;;  %v43_v30 = vmax.f32 %v27_v27, 0.0  ;;  %v44_v32 = vmax.f32 %v28_v31, 0.0 }
   0x8   :  { %408 = vmatmul.mubr.msk.f32.vlgmr.msra.gmra.mrb[0].mxu1 %vm46_vm0, %v38_v14 }
   0x9   :  { %410 = vmatprep.mubr.msk.f32.mxu1 %vm46_vm0, %v39_v15 }
   0xa   :  { %399 = vmatmul.mubr.msk.f32.gmra.mrb[2].mxu0 %vm46_vm0, %v32_v12 }
   0xb   :  { %401 = vmatprep.mubr.msk.f32.mxu0 %vm46_vm0, %v33_v17 }
   0xc   :  { %411 = vmatmul.mubr.msk.f32.gmra.mrb[2].mxu1 %vm46_vm0, %v40_v21 }
   0xd   :  { %413 = vmatprep.mubr.msk.f32.mxu1 %vm46_vm0, %v41_v23 }
   0xe   :  { %402 = vmatmul.mubr.msk.f32.gmra.mrb[4].mxu0 %vm46_vm0, %v34_v22 }
   0xf   :  { %404 = vmatprep.mubr.msk.f32.mxu0 %vm46_vm0, %v35_v25 }
  0x10   :  { %414 = vmatmul.mubr.msk.f32.gmra.mrb[4].mxu1 %vm46_vm0, %v42_v28 }
  0x11   :  { %416 = vmatprep.mubr.msk.f32.mxu1 %vm46_vm0, %v43_v30 }
  0x12   :  { %405 = vmatmul.mubr.msk.f32.gmra.mrb[6].mxu0 %vm46_vm0, %v36_v29 }
  0x14   :  { %417 = vmatmul.mubr.msk.f32.gmra.mrb[6].mxu1 %vm46_vm0, %v44_v32 }
  0xd9   :  { %v397_v33 = vpop.f32.mrb[0].mxu0 }
  0xda   :  { %242 = vst.msk [vmem:[%s616_s2 + $0x8] sm:$0xff] %vm240_vm1, %v397_v33  ;;  %v258_v34 = vsel %vm240_vm1, %v397_v33, 0.0  ;;  %v295_v35 = vmul.f32 %v397_v33, %v397_v33  ;;  %v161_v36 = vpop.f32.mrb[1].mxu0 }
  0xdb   :  { %241 = vst.msk [vmem:[%s616_s2] sm:$0xff] %vm240_vm1, %v161_v36  ;;  %v257_v37 = vsel %vm240_vm1, %v161_v36, 0.0  ;;  %v294_v38 = vmul.f32 %v161_v36, %v161_v36  ;;  %v519_v41 = vpop.f32.mrb[0].mxu1 }
  0xdc   :  { %v311_v39 = vsel %vm240_vm1, %v295_v35, 0.0  ;;  %v259_v40 = vadd.f32 %v258_v34, %v257_v37  ;;  %250 = vst.msk [vmem:[%s616_s2 + $0x48] sm:$0xff] %vm240_vm1, %v519_v41  ;;  %v201_v44 = vpop.f32.mrb[1].mxu1  ;;  %v303_v24 = vmul.f32 %v519_v41, %v519_v41  ;;  %v274_v29 = vsel %vm240_vm1, %v519_v41, 0.0 }
  0xdd   :  { %v310_v42 = vsel %vm240_vm1, %v294_v38, 0.0  ;;  %v400_v43 = vpop.f32.mrb[2].mxu0  ;;  %249 = vst.msk [vmem:[%s616_s2 + $0x40] sm:$0xff] %vm240_vm1, %v201_v44  ;;  %v302_v9 = vmul.f32 %v201_v44, %v201_v44  ;;  %v272_v19 = vsel %vm240_vm1, %v201_v44, 0.0 }
  0xde   :  { %v312_v45 = vadd.f32 %v311_v39, %v310_v42  ;;  %244 = vst.msk [vmem:[%s616_s2 + $0x18] sm:$0xff] %vm240_vm1, %v400_v43  ;;  %v171_v46 = vpop.f32.mrb[3].mxu0  ;;  %v297_v47 = vmul.f32 %v400_v43, %v400_v43  ;;  %v262_v52 = vsel %vm240_vm1, %v400_v43, 0.0  ;;  %v327_v33 = vsel %vm240_vm1, %v303_v24, 0.0 }
  0xdf   :  { %243 = vst.msk [vmem:[%s616_s2 + $0x10] sm:$0xff] %vm240_vm1, %v171_v46  ;;  %v260_v48 = vsel %vm240_vm1, %v171_v46, 0.0  ;;  %v296_v49 = vmul.f32 %v171_v46, %v171_v46  ;;  %v412_v51 = vpop.f32.mrb[2].mxu1  ;;  %v325_v25 = vsel %vm240_vm1, %v302_v9, 0.0 }
  0xe0   :  { %v261_v50 = vadd.f32 %v260_v48, %v259_v40  ;;  %252 = vst.msk [vmem:[%s616_s2 + $0x58] sm:$0xff] %vm240_vm1, %v412_v51  ;;  %v211_v55 = vpop.f32.mrb[3].mxu1  ;;  %v315_v59 = vsel %vm240_vm1, %v297_v47, 0.0  ;;  %v305_v34 = vmul.f32 %v412_v51, %v412_v51  ;;  %v278_v39 = vsel %vm240_vm1, %v412_v51, 0.0 }
  0xe1   :  { %v313_v53 = vsel %vm240_vm1, %v296_v49, 0.0  ;;  %v403_v54 = vpop.f32.mrb[4].mxu0  ;;  %251 = vst.msk [vmem:[%s616_s2 + $0x50] sm:$0xff] %vm240_vm1, %v211_v55  ;;  %v304_v26 = vmul.f32 %v211_v55, %v211_v55  ;;  %v276_v30 = vsel %vm240_vm1, %v211_v55, 0.0 }
  0xe2   :  { %v314_v56 = vadd.f32 %v313_v53, %v312_v45  ;;  %246 = vst.msk [vmem:[%s616_s2 + $0x28] sm:$0xff] %vm240_vm1, %v403_v54  ;;  %v181_v57 = vpop.f32.mrb[5].mxu0  ;;  %v263_v58 = vadd.f32 %v262_v52, %v261_v50  ;;  %v299_v60 = vmul.f32 %v403_v54, %v403_v54  ;;  %v266_v2 = vsel %vm240_vm1, %v403_v54, 0.0 }
  0xe3   :  { %245 = vst.msk [vmem:[%s616_s2 + $0x20] sm:$0xff] %vm240_vm1, %v181_v57  ;;  %v264_v61 = vsel %vm240_vm1, %v181_v57, 0.0  ;;  %v298_v62 = vmul.f32 %v181_v57, %v181_v57  ;;  %v415_v1 = vpop.f32.mrb[4].mxu1  ;;  %v329_v35 = vsel %vm240_vm1, %v304_v26, 0.0  ;;  %v331_v41 = vsel %vm240_vm1, %v305_v34, 0.0 }
  0xe4   :  { %v265_v63 = vadd.f32 %v264_v61, %v263_v58  ;;  %v316_v0 = vadd.f32 %v315_v59, %v314_v56  ;;  %254 = vst.msk [vmem:[%s616_s2 + $0x68] sm:$0xff] %vm240_vm1, %v415_v1  ;;  %v221_v5 = vpop.f32.mrb[5].mxu1  ;;  %v319_v10 = vsel %vm240_vm1, %v299_v60, 0.0  ;;  %v307_v44 = vmul.f32 %v415_v1, %v415_v1 }
  0xe5   :  { %v317_v3 = vsel %vm240_vm1, %v298_v62, 0.0  ;;  %v406_v4 = vpop.f32.mrb[6].mxu0  ;;  %253 = vst.msk [vmem:[%s616_s2 + $0x60] sm:$0xff] %vm240_vm1, %v221_v5  ;;  %v306_v36 = vmul.f32 %v221_v5, %v221_v5  ;;  %v280_v40 = vsel %vm240_vm1, %v221_v5, 0.0  ;;  %v282_v49 = vsel %vm240_vm1, %v415_v1, 0.0 }
  0xe6   :  { %v318_v6 = vadd.f32 %v317_v3, %v316_v0  ;;  %248 = vst.msk [vmem:[%s616_s2 + $0x38] sm:$0xff] %vm240_vm1, %v406_v4  ;;  %v191_v7 = vpop.f32.mrb[7].mxu0  ;;  %v267_v8 = vadd.f32 %v266_v2, %v265_v63  ;;  %v301_v11 = vmul.f32 %v406_v4, %v406_v4  ;;  %v270_v17 = vsel %vm240_vm1, %v406_v4, 0.0 }
  0xe7   :  { %247 = vst.msk [vmem:[%s616_s2 + $0x30] sm:$0xff] %vm240_vm1, %v191_v7  ;;  %v268_v12 = vsel %vm240_vm1, %v191_v7, 0.0  ;;  %v300_v13 = vmul.f32 %v191_v7, %v191_v7  ;;  %v418_v16 = vpop.f32.mrb[6].mxu1  ;;  %v333_v45 = vsel %vm240_vm1, %v306_v36, 0.0  ;;  %v335_v51 = vsel %vm240_vm1, %v307_v44, 0.0 }
  0xe8   :  { %v269_v14 = vadd.f32 %v268_v12, %v267_v8  ;;  %v320_v15 = vadd.f32 %v319_v10, %v318_v6  ;;  %256 = vst.msk [vmem:[%s616_s2 + $0x78] sm:$0xff] %vm240_vm1, %v418_v16  ;;  %v231_v20 = vpop.f32.mrb[7].mxu1  ;;  %v323_v23 = vsel %vm240_vm1, %v301_v11, 0.0  ;;  %v309_v54 = vmul.f32 %v418_v16, %v418_v16 }
  0xe9   :  { %v321_v18 = vsel %vm240_vm1, %v300_v13, 0.0  ;;  %255 = vst.msk [vmem:[%s616_s2 + $0x70] sm:$0xff] %vm240_vm1, %v231_v20  ;;  %v308_v46 = vmul.f32 %v231_v20, %v231_v20  ;;  %v284_v50 = vsel %vm240_vm1, %v231_v20, 0.0  ;;  %v286_v58 = vsel %vm240_vm1, %v418_v16, 0.0 }
  0xea   :  { %v271_v21 = vadd.f32 %v270_v17, %v269_v14  ;;  %v322_v22 = vadd.f32 %v321_v18, %v320_v15  ;;  %v339_v61 = vsel %vm240_vm1, %v309_v54, 0.0 }
  0xeb   :  { %v337_v55 = vsel %vm240_vm1, %v308_v46, 0.0 }
  0xec   :  { %v324_v27 = vadd.f32 %v323_v23, %v322_v22  ;;  %v273_v28 = vadd.f32 %v272_v19, %v271_v21 }
  0xee   :  { %v326_v31 = vadd.f32 %v325_v25, %v324_v27  ;;  %v275_v32 = vadd.f32 %v274_v29, %v273_v28 }
  0xf0   :  { %v277_v37 = vadd.f32 %v276_v30, %v275_v32  ;;  %v328_v38 = vadd.f32 %v327_v33, %v326_v31 }
  0xf2   :  { %v330_v42 = vadd.f32 %v329_v35, %v328_v38  ;;  %v279_v43 = vadd.f32 %v278_v39, %v277_v37 }
  0xf4   :  { %v281_v47 = vadd.f32 %v280_v40, %v279_v43  ;;  %v332_v48 = vadd.f32 %v331_v41, %v330_v42 }
  0xf6   :  { %v334_v52 = vadd.f32 %v333_v45, %v332_v48  ;;  %v283_v53 = vadd.f32 %v282_v49, %v281_v47 }
  0xf8   :  { %v285_v56 = vadd.f32 %v284_v50, %v283_v53  ;;  %v336_v57 = vadd.f32 %v335_v51, %v334_v52 }
  0xfa   :  { %v287_v59 = vadd.f32 %v286_v58, %v285_v56  ;;  %v338_v60 = vadd.f32 %v337_v55, %v336_v57 }
  0xfc   :  { %v288_v62 = vrot.slane %v287_v59, 4  ;;  %v340_v63 = vadd.f32 %v339_v61, %v338_v60 }
  0xfe   :  { %v289_v0 = vadd.f32 %v288_v62, %v287_v59  ;;  %v341_v1 = vrot.slane %v340_v63, 4 }
 0x100   :  { %v290_v2 = vrot.slane %v289_v0, 2  ;;  %v342_v3 = vadd.f32 %v341_v1, %v340_v63 }
 0x102   :  { %v291_v4 = vadd.f32 %v290_v2, %v289_v0  ;;  %v343_v5 = vrot.slane %v342_v3, 2 }
 0x104   :  { %v292_v6 = vrot.slane %v291_v4, 1  ;;  %v344_v7 = vadd.f32 %v343_v5, %v342_v3 }
 0x106   :  { %v345_v8 = vrot.slane %v344_v7, 1  ;;  %v293_v9 = vadd.f32 %v292_v6, %v291_v4 }
 0x108   :  { %v346_v10 = vadd.f32 %v345_v8, %v344_v7 }
 0x10a   :  { %v348_v11 = vsel %vm347_vm2, %v293_v9, %v346_v10 }
 0x10b   :  { %v350_v12 = vsel %vm349_vm3, %v348_v11, 0.0 }
 0x10c   :  { %351 = vst.msk [vmem:[%s617_s3] sm:$0xff] %vm240_vm1, %v350_v12 }

</bundles_post_ra>
